<compile_context>
chip_gen: v7x
topology: tpu7x:2x2x1
jax: 0.10.0
libtpu: 0.0.40
codegen_flags: <defaults>
</compile_context>

<pallas_src>
import functools

import jax
import jax.numpy as jnp
from jax.experimental import pallas as pl
from jax.experimental.pallas import tpu as pltpu

BN_EPS = 1e-5


# -------------------- generation-aware VMEM budgeting ------------------------
def _detect_vmem_capacity_bytes():
    try:
        info = pltpu.get_tpu_info()
        cap = int(getattr(info, "vmem_capacity_bytes", 0) or 0)
        if cap > 0:
            return cap
    except Exception:
        pass
    return 128 * 1024 * 1024  # v5e/v6e default


_VMEM_CAPACITY_BYTES = _detect_vmem_capacity_bytes()
if _VMEM_CAPACITY_BYTES <= 64 * 1024 * 1024:        # v7x-class (64 MiB physical)
    _VMEM_LIMIT_BYTES = 44 * 1024 * 1024
    _BLOCK_BUDGET_BYTES = 6 * 1024 * 1024
else:                                               # v5e / v6e (128 MiB physical)
    _VMEM_LIMIT_BYTES = 96 * 1024 * 1024
    _BLOCK_BUDGET_BYTES = 12 * 1024 * 1024


def _choose_row_tile(rows, bytes_per_row, budget_bytes, min_steps=1):
    """Largest divisor of `rows` fitting the budget; >=min_steps grid steps."""
    max_rows = max(1, budget_bytes // max(1, bytes_per_row))
    cap = rows if min_steps <= 1 else max(1, rows // min_steps)
    t = max(1, min(rows, max_rows, cap))
    while rows % t:
        t -= 1
    return t
    # TODO(synk): for awkward (prime) heights this can collapse to a tiny tile;
    # a cdiv grid + pl.Buffered(3) on the main input would keep DMA hidden.


def _fold_bn(params, dtype):
    """Fold conv bias + BN running stats into (w[Cin,Cout] in `dtype`, f32 off[1,Cout])."""
    scale = params["gamma"] * jax.lax.rsqrt(params["var"] + BN_EPS)          # (Cout,)
    w = (jnp.transpose(params["w"]).astype(jnp.float32) * scale[None, :]).astype(dtype)
    off = (params["b"] - params["mean"]) * scale + params["beta"]            # (Cout,)
    return w, off.reshape(1, -1).astype(jnp.float32)


# --------------------- keep path: 1x1 conv (+folded BN) ---------------------
def _conv1x1_kernel(x_ref, w_ref, off_ref, o_ref):
    acc = jnp.dot(x_ref[...], w_ref[...], preferred_element_type=jnp.float32)
    o_ref[...] = (acc + off_ref[...]).astype(o_ref.dtype)


def conv1x1_nhwc(x, w, off):
    n, h, wd, cin = x.shape
    cout = w.shape[1]
    m = n * h * wd
    x2d = x.reshape(m, cin)

    # Row tile from the per-generation block budget (multiple of 8).  Ragged
    # tails are handled by a cdiv grid - never one giant full-M block - and we
    # keep >=2 grid steps when possible so both v7x TensorCores get work.
    itm = x.dtype.itemsize
    bytes_per_row = 2 * itm * (cin + cout) + 4 * cout
    tm = max(8, (_BLOCK_BUDGET_BYTES // max(1, bytes_per_row)) // 8 * 8)
    if m >= 16:
        tm = min(tm, max(8, (m // 2) // 8 * 8))
    if tm >= m:
        tm = m
    grid = pl.cdiv(m, tm)

    out = pl.pallas_call(
        _conv1x1_kernel,
        out_shape=jax.ShapeDtypeStruct((m, cout), x.dtype),
        grid_spec=pltpu.PrefetchScalarGridSpec(
            num_scalar_prefetch=0,
            grid=(grid,),
            in_specs=[pl.BlockSpec((tm, cin), lambda i: (i, 0)),
                      pl.BlockSpec((cin, cout), lambda i: (0, 0)),
                      pl.BlockSpec((1, cout), lambda i: (0, 0))],
            out_specs=pl.BlockSpec((tm, cout), lambda i: (i, 0)),
        ),
        compiler_params=pltpu.CompilerParams(
            dimension_semantics=("parallel",),
            vmem_limit_bytes=_VMEM_LIMIT_BYTES),
    )(x2d, w, off)
    return out.reshape(n, h, wd, cout)


# ------------------ down path: fused [conv1x1] + 2x2 pooling -----------------
def _down_kernel(*refs, cin, cout, pooling_type, conv_first, has_conv):
    if has_conv:
        x_ref, w_ref, off_ref, o_ref = refs
    else:
        x_ref, o_ref = refs
        w_ref = off_ref = None

    # x block: (1, TH, 2, WO, 2*Cin).  Phase (p, q) of the 2x2 pooling window
    # of output pixel (i, j) lives at [0, i, p, j, q*Cin:(q+1)*Cin] (the
    # stride-2 decomposition is a free wrapper reshape).
    a = x_ref[0, :, 0, :, :]                       # H-phase 0, lane-dense (TH, WO, 2*Cin)
    b = x_ref[0, :, 1, :, :]                       # H-phase 1
    th, wo, _ = a.shape

    def conv(v):                                   # (TH, WO, K) @ (K, Cout) -> f32
        k = v.shape[-1]
        y = jnp.dot(v.reshape(th * wo, k), w_ref[...],
                    preferred_element_type=jnp.float32)
        return y.reshape(th, wo, cout)

    if pooling_type == "avg":
        if has_conv:
            # conv1x1 is linear -> pool-then-conv == conv-then-pool.  The stacked
            # (2*Cin, Cout) weight sums both W-phases inside ONE MXU pass.
            y = 0.25 * conv(a + b) + off_ref[...]
        else:
            hs = a.astype(jnp.float32) + b.astype(jnp.float32)
            y = 0.25 * (hs[..., :cin] + hs[..., cin:])
    else:  # max
        if has_conv and conv_first:
            # Exact PyTorch order (conv -> max); the per-channel offset commutes
            # with max so it is added once after the reduction.
            # TODO(synk): batch the four phase matmuls into one (4*TH*WO, Cin)
            # dot to amortize MXU weight-push when Cin is small.
            y = jnp.maximum(
                jnp.maximum(conv(a[..., :cin]), conv(a[..., cin:])),
                jnp.maximum(conv(b[..., :cin]), conv(b[..., cin:])),
            ) + off_ref[...]
        else:
            hm = jnp.maximum(a, b)                           # lane-dense H combine
            m = jnp.maximum(hm[..., :cin], hm[..., cin:])    # W combine
            y = (conv(m) + off_ref[...]) if has_conv else m

    o_ref[0] = y.astype(o_ref.dtype)


def down_resize_nhwc(x, w=None, off=None, *, pooling_type="max", conv_first=True):
    n, h, wd, cin = x.shape
    if h % 2 or wd % 2:
        # PyTorch MaxPool2d/AvgPool2d(k=2, s=2, pad=0) floors: drop last row/col.
        x = x[:, : (h // 2) * 2, : (wd // 2) * 2, :]
        h, wd = (h // 2) * 2, (wd // 2) * 2
    h2, wo = h // 2, wd // 2
    has_conv = w is not None
    cout = w.shape[1] if has_conv else cin

    # Free, contiguous repack (pure metadata): (N,H,W,C) -> (N,H/2,2,W/2,2C).
    # TODO(synk): for Cin not a multiple of 128 an (N,H/2,2,W,Cin) repack with
    # stride-2 sublane slices would keep every load fully lane-aligned.
    xr = x.reshape(n, h2, 2, wo, 2 * cin)

    w_pass = w
    if has_conv and pooling_type == "avg":
        w_pass = jnp.concatenate([w, w], axis=0)       # (2*Cin, Cout) stacked weight

    itm = x.dtype.itemsize
    bytes_per_row = 4 * itm * wd * cin + 24 * wo * cout + 2 * itm * wo * cout
    min_steps = 1 if n >= 2 else 2                      # keep both v7x cores busy
    th = _choose_row_tile(h2, bytes_per_row, _BLOCK_BUDGET_BYTES, min_steps)

    in_specs = [pl.BlockSpec((1, th, 2, wo, 2 * cin), lambda nb, i: (nb, i, 0, 0, 0))]
    args = [xr]
    if has_conv:
        in_specs += [pl.BlockSpec(w_pass.shape, lambda nb, i: (0, 0)),
                     pl.BlockSpec((1, cout), lambda nb, i: (0, 0))]
        args += [w_pass, off]

    kernel = functools.partial(_down_kernel, cin=cin, cout=cout,
                               pooling_type=pooling_type,
                               conv_first=conv_first, has_conv=has_conv)
    return pl.pallas_call(
        kernel,
        out_shape=jax.ShapeDtypeStruct((n, h2, wo, cout), x.dtype),
        grid_spec=pltpu.PrefetchScalarGridSpec(
            num_scalar_prefetch=0,
            grid=(n, h2 // th),
            in_specs=in_specs,
            out_specs=pl.BlockSpec((1, th, wo, cout), lambda nb, i: (nb, i, 0, 0)),
        ),
        compiler_params=pltpu.CompilerParams(
            dimension_semantics=("parallel", "parallel"),
            vmem_limit_bytes=_VMEM_LIMIT_BYTES),
    )(*args)


# -------------- up path: fused [conv1x1] + bilinear 2x upsample --------------
def _up_kernel(*refs, cout, has_conv):
    if has_conv:
        xp_ref, x_ref, xn_ref, w_ref, off_ref, o_ref = refs
    else:
        xp_ref, x_ref, xn_ref, o_ref = refs
        w_ref = off_ref = None

    th, wd, cin = x_ref.shape[1], x_ref.shape[2], x_ref.shape[3]
    rows = th + 2

    # Rows [r0-1, r0+TH], edge-clamped by the halo BlockSpecs' index maps.
    x = jnp.concatenate([xp_ref[0], x_ref[0], xn_ref[0]], axis=0)   # (rows, W, Cin)
    x2 = x.reshape(rows * wd, cin)

    if has_conv:
        y = jnp.dot(x2, w_ref[...], preferred_element_type=jnp.float32) + off_ref[...]
    else:
        y = x2.astype(jnp.float32)                                   # (rows*W, C)

    # ---- W-direction bilinear x2 (align_corners=False), ONE roll per direction.
    # The W axis is folded into the sublane axis of the flattened (rows*W, C)
    # slab; wrap-around across row boundaries lands exactly on the positions
    # that the edge-clamp select overwrites anyway.
    m = rows * wd
    col = jax.lax.broadcasted_iota(jnp.int32, y.shape, 0) % wd
    y_prev = jnp.where(col == 0, y, pltpu.roll(y, shift=1, axis=0))          # x[:, j-1], clamped
    y_next = jnp.where(col == wd - 1, y, pltpu.roll(y, shift=m - 1, axis=0))  # x[:, j+1], clamped
    ze = 0.25 * y_prev + 0.75 * y            # even output columns
    zo = 0.75 * y + 0.25 * y_next            # odd output columns

    # Even/odd columns packed on lanes -> lane-dense full-width stores below.
    z = jnp.concatenate([ze, zo], axis=-1).reshape(rows, wd, 2 * cout)

    # ---- H-direction bilinear x2 on the (TH+2)-row slab (pure row slices):
    #   out[2i]   = 0.25 * x[i-1] + 0.75 * x[i]
    #   out[2i+1] = 0.75 * x[i]   + 0.25 * x[i+1]
    out_even = 0.25 * z[0:th] + 0.75 * z[1:th + 1]
    out_odd = 0.75 * z[1:th + 1] + 0.25 * z[2:th + 2]

    dt = o_ref.dtype
    # Output block: (1, TH, 2, W, 2*Cout); final (N,2H,2W,Cout) reshape in the
    # wrapper is a zero-copy contiguous collapse.
    o_ref[0, :, 0, :, :] = out_even.astype(dt)
    o_ref[0, :, 1, :, :] = out_odd.astype(dt)


def up_resize_nhwc(x, w=None, off=None):
    n, h, wd, cin = x.shape
    has_conv = w is not None
    cout = w.shape[1] if has_conv else cin

    itm = x.dtype.itemsize
    # ~double-buffered in/out blocks + f32 interpolation temporaries per row.
    bytes_per_row = wd * (2 * itm * cin + 8 * itm * cout + 40 * cout)
    min_steps = 1 if n >= 2 else 2
    th = _choose_row_tile(h, bytes_per_row, _BLOCK_BUDGET_BYTES, min_steps)
    nt = h // th

    main_spec = pl.BlockSpec((1, th, wd, cin), lambda nb, i: (nb, i, 0, 0))
    # Row halo: block size 1 along H, so the (clamped) block index IS the row
    # index; the clamping also implements the bilinear edge replication.
    prev_spec = pl.BlockSpec(
        (1, 1, wd, cin), lambda nb, i: (nb, jnp.maximum(i * th - 1, 0), 0, 0))
    next_spec = pl.BlockSpec(
        (1, 1, wd, cin), lambda nb, i: (nb, jnp.minimum(i * th + th, h - 1), 0, 0))

    in_specs = [prev_spec, main_spec, next_spec]
    args = [x, x, x]
    if has_conv:
        in_specs += [pl.BlockSpec((cin, cout), lambda nb, i: (0, 0)),
                     pl.BlockSpec((1, cout), lambda nb, i: (0, 0))]
        args += [w, off]

    out = pl.pallas_call(
        functools.partial(_up_kernel, cout=cout, has_conv=has_conv),
        out_shape=jax.ShapeDtypeStruct((n, h, 2, wd, 2 * cout), x.dtype),
        grid_spec=pltpu.PrefetchScalarGridSpec(
            num_scalar_prefetch=0,
            grid=(n, nt),
            in_specs=in_specs,
            out_specs=pl.BlockSpec((1, th, 2, wd, 2 * cout),
                                   lambda nb, i: (nb, i, 0, 0, 0)),
        ),
        compiler_params=pltpu.CompilerParams(
            dimension_semantics=("parallel", "parallel"),
            vmem_limit_bytes=_VMEM_LIMIT_BYTES),
    )(*args)
    return out.reshape(n, 2 * h, 2 * wd, cout)   # contiguous -> zero-copy


# ----------------------------- module wrappers -------------------------------
def init_params(key, in_channels, out_channels, use_bn=True):
    """MaybeApply1x1 parameters (None when in_channels == out_channels)."""
    if in_channels == out_channels:
        return None
    k1, k2, k3, k4, k5, k6 = jax.random.split(key, 6)
    p = {
        "w": 0.1 * jax.random.normal(k1, (out_channels, in_channels), jnp.float32),
        "b": 0.1 * jax.random.normal(k2, (out_channels,), jnp.float32),
    }
    if use_bn:
        p["gamma"] = 1.0 + 0.1 * jax.random.normal(k3, (out_channels,), jnp.float32)
        p["beta"] = 0.1 * jax.random.normal(k4, (out_channels,), jnp.float32)
        p["mean"] = 0.1 * jax.random.normal(k5, (out_channels,), jnp.float32)
        p["var"] = 0.5 + jnp.abs(jax.random.normal(k6, (out_channels,), jnp.float32))
    else:
        p["gamma"] = jnp.ones((out_channels,), jnp.float32)
        p["beta"] = jnp.zeros((out_channels,), jnp.float32)
        p["mean"] = jnp.zeros((out_channels,), jnp.float32)
        p["var"] = jnp.ones((out_channels,), jnp.float32)
    return p


def resize_forward_nhwc(x, sampling, params=None, pooling_type="max",
                        conv_after_downsample=False):
    """NHWC entry point (preferred when the surrounding BiFPN carries NHWC)."""
    assert sampling in ("down", "up", "keep")
    w = off = None
    if params is not None:
        w, off = _fold_bn(params, x.dtype)
    if sampling == "down":
        return down_resize_nhwc(x, w, off, pooling_type=pooling_type,
                                conv_first=not conv_after_downsample)
    if sampling == "up":
        return up_resize_nhwc(x, w, off)
    return x if w is None else conv1x1_nhwc(x, w, off)   # keep


def resize_forward(x_nchw, sampling, params=None, pooling_type="max",
                   conv_after_downsample=False):
    """NCHW wrapper matching the PyTorch module interface."""
    # TODO(synk): each transpose is a full HBM round trip; inside a BiFPN use
    # resize_forward_nhwc end-to-end to remove them (the largest wall-clock win).
    x = jnp.transpose(x_nchw, (0, 2, 3, 1))  # NCHW -> NHWC
    x = resize_forward_nhwc(x, sampling, params, pooling_type, conv_after_downsample)
    return jnp.transpose(x, (0, 3, 1, 2))    # NHWC -> NCHW


# ------------------------- plain-JAX reference (NCHW) ------------------------
def resize_reference(x, sampling, params=None, pooling_type="max",
                     conv_after_downsample=False):
    def maybe_conv(v):
        if params is None:
            return v
        y = jnp.einsum("nchw,oc->nohw", v, params["w"]) + params["b"][None, :, None, None]
        scale = params["gamma"] / jnp.sqrt(params["var"] + BN_EPS)
        return (y - params["mean"][None, :, None, None]) * scale[None, :, None, None] \
            + params["beta"][None, :, None, None]

    def pool(v):
        n, c, h, w = v.shape
        v = v[:, :, : (h // 2) * 2, : (w // 2) * 2]
        vr = v.reshape(n, c, h // 2, 2, w // 2, 2)
        return vr.max(axis=(3, 5)) if pooling_type == "max" else vr.mean(axis=(3, 5))

    def up1d(v, axis):
        prev = jnp.concatenate(
            [jax.lax.slice_in_dim(v, 0, 1, axis=axis),
             jax.lax.slice_in_dim(v, 0, v.shape[axis] - 1, axis=axis)], axis=axis)
        nxt = jnp.concatenate(
            [jax.lax.slice_in_dim(v, 1, v.shape[axis], axis=axis),
             jax.lax.slice_in_dim(v, v.shape[axis] - 1, v.shape[axis], axis=axis)], axis=axis)
        even = 0.25 * prev + 0.75 * v
        odd = 0.75 * v + 0.25 * nxt
        st = jnp.stack([even, odd], axis=axis + 1)
        shp = list(v.shape)
        shp[axis] *= 2
        return st.reshape(shp)

    if sampling == "down":
        if not conv_after_downsample:
            x = maybe_conv(x)
        x = pool(x)
        if conv_after_downsample:
            x = maybe_conv(x)
    else:
        x = maybe_conv(x)
        if sampling == "up":
            x = up1d(up1d(x, 2), 3)
    return x


if __name__ == "__main__":
    key = jax.random.PRNGKey(0)
    kx, kp = jax.random.split(key)

    n, cin, cout, h, w = 2, 4, 8, 16, 16
    x = jax.random.normal(kx, (n, cin, h, w), jnp.float32)
    params = init_params(kp, cin, cout, use_bn=True)

    configs = [
        # (sampling, pooling_type, conv_after_downsample, use 1x1 conv params)
        ("down", "max", False, True),
        ("down", "avg", False, True),
        ("down", "max", True, True),
        ("down", "avg", True, True),
        ("up", "max", False, True),
        ("keep", "max", False, True),
        ("down", "max", False, False),   # in_channels == out_channels (no conv)
        ("down", "avg", False, False),
        ("up", "max", False, False),
        ("keep", "max", False, False),
    ]
    for sampling, pooling, conv_after, with_conv in configs:
        p = params if with_conv else None
        out = resize_forward(x, sampling, p, pooling, conv_after)
        out = jax.block_until_ready(out)
        ref = resize_reference(x, sampling, p, pooling, conv_after)
        assert out.shape == ref.shape, (sampling, out.shape, ref.shape)
        assert jnp.allclose(out, ref, atol=1e-4, rtol=1e-4), \
            f"mismatch for {sampling}/{pooling}/conv_after={conv_after}/conv={with_conv}"

    print("KERNEL_OK")
</pallas_src>

<mosaic_0001>
module attributes {stable_mosaic.version = 11 : i64} {
  func.func @_down_kernel(%arg0: i32, %arg1: i32, %arg2: memref<1x8x2x8x8xf32, #tpu.memory_space<vmem>>, %arg3: memref<4x8xf32, #tpu.memory_space<vmem>>, %arg4: memref<1x8xf32, #tpu.memory_space<vmem>>, %arg5: memref<1x8x8x8xf32, #tpu.memory_space<vmem>>) attributes {dimension_semantics = [#tpu.dimension_semantics<parallel>, #tpu.dimension_semantics<parallel>], iteration_bounds = array<i64: 2, 1>, scalar_prefetch = 0 : i64, scratch_operands = 0 : i64, tpu.core_type = #tpu.core_type<tc>, window_params = [{transform_indices = @transform_0, window_bounds = array<i64: 1, 8, 2, 8, 8>}, {pipeline_mode = #tpu.pipeline_mode<synchronous>, transform_indices = @transform_1, window_bounds = array<i64: 4, 8>}, {pipeline_mode = #tpu.pipeline_mode<synchronous>, transform_indices = @transform_2, window_bounds = array<i64: 1, 8>}, {transform_indices = @transform_3, window_bounds = array<i64: 1, 8, 8, 8>}]} {
    %c0 = arith.constant 0 : index
    %c0_0 = arith.constant 0 : index
    %c0_1 = arith.constant 0 : index
    %c0_2 = arith.constant 0 : index
    %c0_3 = arith.constant 0 : index
    %0 = vector.load %arg2[%c0, %c0_0, %c0_1, %c0_2, %c0_3] : memref<1x8x2x8x8xf32, #tpu.memory_space<vmem>>, vector<1x8x1x8x8xf32>
    %1 = vector.shape_cast %0 : vector<1x8x1x8x8xf32> to vector<8x8x8xf32>
    %c0_4 = arith.constant 0 : index
    %c0_5 = arith.constant 0 : index
    %c1 = arith.constant 1 : index
    %c0_6 = arith.constant 0 : index
    %c0_7 = arith.constant 0 : index
    %2 = vector.load %arg2[%c0_4, %c0_5, %c1, %c0_6, %c0_7] : memref<1x8x2x8x8xf32, #tpu.memory_space<vmem>>, vector<1x8x1x8x8xf32>
    %3 = vector.shape_cast %2 : vector<1x8x1x8x8xf32> to vector<8x8x8xf32>
    %4 = vector.extract_strided_slice %1 {offsets = [0, 0, 0], sizes = [8, 8, 4], strides = [1, 1, 1]} : vector<8x8x8xf32> to vector<8x8x4xf32>
    %5 = vector.shape_cast %4 : vector<8x8x4xf32> to vector<64x4xf32>
    %c0_8 = arith.constant 0 : index
    %c0_9 = arith.constant 0 : index
    %6 = vector.load %arg3[%c0_8, %c0_9] : memref<4x8xf32, #tpu.memory_space<vmem>>, vector<4x8xf32>
    %cst = arith.constant dense<0.000000e+00> : vector<64x8xf32>
    %7 = tpu.matmul %5, %6, %cst {dimension_numbers = #tpu.dot_dimension_numbers<[1], [0], [0], [1], [0, 0, 1, 1], [], []>} : vector<64x4xf32>, vector<4x8xf32>, vector<64x8xf32> -> vector<64x8xf32>
    %8 = vector.shape_cast %7 : vector<64x8xf32> to vector<8x8x8xf32>
    %9 = vector.extract_strided_slice %1 {offsets = [0, 0, 4], sizes = [8, 8, 4], strides = [1, 1, 1]} : vector<8x8x8xf32> to vector<8x8x4xf32>
    %10 = vector.shape_cast %9 : vector<8x8x4xf32> to vector<64x4xf32>
    %c0_10 = arith.constant 0 : index
    %c0_11 = arith.constant 0 : index
    %11 = vector.load %arg3[%c0_10, %c0_11] : memref<4x8xf32, #tpu.memory_space<vmem>>, vector<4x8xf32>
    %cst_12 = arith.constant dense<0.000000e+00> : vector<64x8xf32>
    %12 = tpu.matmul %10, %11, %cst_12 {dimension_numbers = #tpu.dot_dimension_numbers<[1], [0], [0], [1], [0, 0, 1, 1], [], []>} : vector<64x4xf32>, vector<4x8xf32>, vector<64x8xf32> -> vector<64x8xf32>
    %13 = vector.shape_cast %12 : vector<64x8xf32> to vector<8x8x8xf32>
    %14 = arith.maximumf %8, %13 : vector<8x8x8xf32>
    %15 = vector.extract_strided_slice %3 {offsets = [0, 0, 0], sizes = [8, 8, 4], strides = [1, 1, 1]} : vector<8x8x8xf32> to vector<8x8x4xf32>
    %16 = vector.shape_cast %15 : vector<8x8x4xf32> to vector<64x4xf32>
    %c0_13 = arith.constant 0 : index
    %c0_14 = arith.constant 0 : index
    %17 = vector.load %arg3[%c0_13, %c0_14] : memref<4x8xf32, #tpu.memory_space<vmem>>, vector<4x8xf32>
    %cst_15 = arith.constant dense<0.000000e+00> : vector<64x8xf32>
    %18 = tpu.matmul %16, %17, %cst_15 {dimension_numbers = #tpu.dot_dimension_numbers<[1], [0], [0], [1], [0, 0, 1, 1], [], []>} : vector<64x4xf32>, vector<4x8xf32>, vector<64x8xf32> -> vector<64x8xf32>
    %19 = vector.shape_cast %18 : vector<64x8xf32> to vector<8x8x8xf32>
    %20 = vector.extract_strided_slice %3 {offsets = [0, 0, 4], sizes = [8, 8, 4], strides = [1, 1, 1]} : vector<8x8x8xf32> to vector<8x8x4xf32>
    %21 = vector.shape_cast %20 : vector<8x8x4xf32> to vector<64x4xf32>
    %c0_16 = arith.constant 0 : index
    %c0_17 = arith.constant 0 : index
    %22 = vector.load %arg3[%c0_16, %c0_17] : memref<4x8xf32, #tpu.memory_space<vmem>>, vector<4x8xf32>
    %cst_18 = arith.constant dense<0.000000e+00> : vector<64x8xf32>
    %23 = tpu.matmul %21, %22, %cst_18 {dimension_numbers = #tpu.dot_dimension_numbers<[1], [0], [0], [1], [0, 0, 1, 1], [], []>} : vector<64x4xf32>, vector<4x8xf32>, vector<64x8xf32> -> vector<64x8xf32>
    %24 = vector.shape_cast %23 : vector<64x8xf32> to vector<8x8x8xf32>
    %25 = arith.maximumf %19, %24 : vector<8x8x8xf32>
    %26 = arith.maximumf %14, %25 : vector<8x8x8xf32>
    %c0_19 = arith.constant 0 : index
    %c0_20 = arith.constant 0 : index
    %27 = vector.load %arg4[%c0_19, %c0_20] : memref<1x8xf32, #tpu.memory_space<vmem>>, vector<1x8xf32>
    %28 = vector.shape_cast %27 : vector<1x8xf32> to vector<1x1x8xf32>
    %29 = vector.broadcast %28 : vector<1x1x8xf32> to vector<8x8x8xf32>
    %30 = arith.addf %26, %29 : vector<8x8x8xf32>
    %c0_21 = arith.constant 0 : index
    %c0_22 = arith.constant 0 : index
    %c0_23 = arith.constant 0 : index
    %c0_24 = arith.constant 0 : index
    %31 = vector.load %arg5[%c0_21, %c0_22, %c0_23, %c0_24] : memref<1x8x8x8xf32, #tpu.memory_space<vmem>>, vector<1x8x8x8xf32>
    %32 = vector.shape_cast %31 : vector<1x8x8x8xf32> to vector<8x8x8xf32>
    %33 = vector.shape_cast %30 : vector<8x8x8xf32> to vector<1x8x8x8xf32>
    tpu.vector_store %arg5[%c0_21, %c0_22, %c0_23, %c0_24], %33 {strides = array<i32>} : memref<1x8x8x8xf32, #tpu.memory_space<vmem>>, vector<1x8x8x8xf32>,
    return
  }
  func.func @transform_0(%arg0: i32, %arg1: i32) -> (i32, i32, i32, i32, i32) {
    %c0_i32 = arith.constant 0 : i32
    %c0_i32_0 = arith.constant 0 : i32
    %c0_i32_1 = arith.constant 0 : i32
    %c0_i32_2 = arith.constant 0 : i32
    return %arg0, %arg1, %c0_i32, %c0_i32_0, %c0_i32_1 : i32, i32, i32, i32, i32
  }
  func.func @transform_1(%arg0: i32, %arg1: i32) -> (i32, i32) {
    %c0_i32 = arith.constant 0 : i32
    %c0_i32_0 = arith.constant 0 : i32
    %c0_i32_1 = arith.constant 0 : i32
    return %c0_i32, %c0_i32_0 : i32, i32
  }
  func.func @transform_2(%arg0: i32, %arg1: i32) -> (i32, i32) {
    %c0_i32 = arith.constant 0 : i32
    %c0_i32_0 = arith.constant 0 : i32
    %c0_i32_1 = arith.constant 0 : i32
    return %c0_i32, %c0_i32_0 : i32, i32
  }
  func.func @transform_3(%arg0: i32, %arg1: i32) -> (i32, i32, i32, i32) {
    %c0_i32 = arith.constant 0 : i32
    %c0_i32_0 = arith.constant 0 : i32
    %c0_i32_1 = arith.constant 0 : i32
    return %arg0, %arg1, %c0_i32, %c0_i32_0 : i32, i32, i32, i32
  }
}

</mosaic_0001>

<bundles_post_ra>
// kernel: tpu_custom_call.1
= control target key start
LH: loop header
LB: loop body
LE: loop exit
PB: predicated region body
PF: predicated region fallthrough
CT: control target
= control target key end

     0   :  { %8 = vsyncpa [#allocation3], 0  ;;  %s1758_s0 = inlined_call_operand.hbm [shape: f32[2,8,2,8,8], index: 0, kind: input, shape index: {}]   ;;  %s1759_s1 = inlined_call_operand.hbm [shape: f32[4,8], index: 1, kind: input, shape index: {}]   ;;  %s1760_s2 = inlined_call_operand.hbm [shape: f32[1,8], index: 2, kind: input, shape index: {}]   ;;  %s1761_s3 = inlined_call_operand.hbm [shape: f32[2,8,8,8], index: 3, kind: output, shape index: {}]  }
   0x1   :  { %10 = vsyncpa [#allocation3 + $0x1], 0 }
   0x2   :  { %11 = vsyncpa [#allocation6], 0 }
   0x3   :  { %12 = vsyncpa [#allocation4], 0 }
   0x4   :  { %14 = vsyncpa [#allocation4 + $0x1], 0  ;;  %s1409_s12 = smov 0   ;;  %s1411_s13 = smov 0  }
   0x5   :  { %s1413_s14 = smov 0   ;;  %s1415_s15 = smov 0  }
   0x6   :  { %s1417_s16 = smov 0   ;;  %s1419_s17 = smov 0  }
   0x7 LB: > { %s960_s18 = sadd.s32 4294967295, %s1378_s17   ;;  %s961_s19 = sadd.s32 4294967294, %s1378_s17   ;;  %s1378_s17 = sphi %s1419_s17, %s20_s17   ;;  %s1374_s16 = sphi %s1417_s16, %s1787_s16   ;;  %s1370_s15 = sphi %s1415_s15, %s1786_s15   ;;  %s1366_s14 = sphi %s1413_s14, %s1785_s14   ;;  %s1362_s13 = sphi %s1411_s13, %s1784_s13   ;;  %s1358_s12 = sphi %s1409_s12, %s1783_s12  }
   0x8   : > { %s41_s20 = sadd.s32 1, %s1366_s14  ;;  %p48_p0 = scmp.ne.s32.totalorder %s1366_s14, %s1362_s13 }
   0x9   : > { %p49_p1 = scmp.eq.s32.totalorder %s1378_s17, 0  ;;  %p54_p2 = scmp.ne.s32.totalorder %s1362_s13, %s1358_s12 }
   0xa   : > { %p1447_p3 = scmp.eq.s32.totalorder %s960_s18, 0  ;;  %p122_p4 = scmp.eq.s32.totalorder %s960_s18, 1 }
   0xb   : > { %p1451_p5 = por %p49_p1, %p48_p0  ;;  %p128_p6 = scmp.eq.s32.totalorder %s961_s19, 1 }
   0xc   : > { %s1768_s21 = scalar_select %p1447_p3, 1, 0 }
   0xd   : > { %p1457_p7 = por %p1447_p3, %p54_p2  ;;  %p1461_p8 = por %p122_p4, %p48_p0 }
   0xe   : > { %p1465_p9 = por %p128_p6, %p54_p2  ;;  %p962_p10 = scmp.ge.s32.totalorder %s1378_s17, 1 }
   0xf   : > { %s1770_s23 = scalar_select %p1457_p7, 1, 0 }
  0x10   : > { %s1771_s24 = scalar_select %p1461_p8, 1, 0 }
  0x11   : > { %s1772_s25 = scalar_select %p1465_p9, 1, 0 }
  0x12   : > { %p135_p11 = scmp.lt.s32.totalorder %s1378_s17, 3  ;;  %s1380_s27 = smov [#allocation5]  }
  0x13   : > { %s148_s28 = sshll.u32 %s1380_s27, 4  ;;  %p1147_p1 = scmp.lt.s32.totalorder %s1378_s17, 2  ;;  %s149_s28 = int_to_ptr.vmem [resolvable:$true] %s148_s28 }
  0x14   : > { %p1472_p13 = pnand %p962_p10, %p135_p11  ;;  %s1381_s30 = smov [#allocation7]  }
  0x15   : > { %p1481_p4 = pnand %p1147_p1, %p1451_p5  ;;  %s159_s4 = sshll.u32 %s1381_s30, 4  ;;  %s1491_s4 = int_to_ptr.vmem [resolvable:$true] %s159_s4 }
  0x16   : > { %s1773_s26 = scalar_select %p1472_p13, 1, 0 }
  0x17   : > { %p1130_p0 = pneg %p1472_p13  ;;  %s1206_s8 = scalar_lea.hbm %s1759_s1, 64 }
  0x18   : > { %s1774_s29 = scalar_select %p1481_p4, 1, 0 }
  0x19   : > { %p1487_p2 = pnand %p1130_p0, %p1447_p3  ;;  %p1207_p5 = scmp.ne.s32.totalorder %s1759_s1, %s1206_s8 }
  0x1a   : > { %p1213_p1 = scmp.lt.u32.totalorder %s1206_s8, %s1759_s1 }
  0x1b   : > { %p1208_p6 = pneg %p1487_p2 }
  0x1d   : > { %p1209_p10 = pnand %p1208_p6, %p1207_p5 }
  0x1f   : > { %p1210_p11 = pneg %p1209_p10 }
  0x21   : > { %p1215_p0 = pnand %p1213_p1, %p1210_p11 }
  0x23   : > { %1218 = shalt.err (!%p1215_p0)
}
  0x24   : > { %s1219_s19 = scalar_lea.vmem %s149_s28, 64  ;;  %p1227_p3 = scmp.lt.s32.totalorder %s149_s28, %s149_s28 }
  0x25   : > { %p1220_p12 = scmp.ne.s32.totalorder %s149_s28, %s1219_s19  ;;  %p1228_p7 = scmp.lt.s32.totalorder %s1219_s19, %s1219_s19 }
  0x27   : > { %p1222_p9 = pnand %p1220_p12, %p1208_p6  ;;  %p1229_p13 = por %p1228_p7, %p1227_p3 }
  0x29   : > { %p1223_p8 = pneg %p1222_p9 }
  0x2b   : > { %p1230_p4 = pnand %p1229_p13, %p1223_p8 }
  0x2d   : > { %1233 = shalt.err (!%p1230_p4)
}
  0x2e   : > { %1133 = dma.hbm_to_vmem [thread:$0]  (!%p1487_p2), %s1759_s1, 64, %s149_s28, [#allocation6]  }
  0x2f   : > { %s1234_s7 = scalar_lea.hbm %s1760_s2, 16 }
  0x30   : > { %p1235_p9 = scmp.ne.s32.totalorder %s1760_s2, %s1234_s7  ;;  %p1241_p8 = scmp.lt.u32.totalorder %s1234_s7, %s1760_s2 }
  0x32   : > { %p1237_p3 = pnand %p1235_p9, %p1208_p6 }
  0x34   : > { %p1238_p7 = pneg %p1237_p3 }
  0x36   : > { %p1243_p12 = pnand %p1241_p8, %p1238_p7 }
  0x38   : > { %1246 = shalt.err (!%p1243_p12)
}
  0x39   : > { %s1247_s28 = scalar_lea.vmem %s1491_s4, 16  ;;  %s1254_s18 = scalar_lea.vmem %s1491_s4, 32 }
  0x3a   : > { %p1248_p13 = scmp.ne.s32.totalorder %s1491_s4, %s1247_s28  ;;  %p1255_p10 = scmp.lt.s32.totalorder %s1491_s4, %s1491_s4 }
  0x3b   : > { %p1256_p11 = scmp.lt.s32.totalorder %s1254_s18, %s1247_s28 }
  0x3c   : > { %p1250_p4 = pnand %p1248_p13, %p1208_p6 }
  0x3d   : > { %p1257_p1 = por %p1256_p11, %p1255_p10 }
  0x3e   : > { %p1251_p5 = pneg %p1250_p4 }
  0x40   : > { %p1258_p0 = pnand %p1257_p1, %p1251_p5 }
  0x42   : > { %1261 = shalt.err (!%p1258_p0)
}
  0x43   : > { %1136 = dma.hbm_to_vmem [thread:$0]  (!%p1487_p2), %s1760_s2, 16, %s1491_s4, [#allocation6]  }
  0x44   : > { %s32_s27 = sadd.s32 1, %s1374_s16  ;;  %s170_s30 = sand.u32 1, %s1366_s14  }
  0x45   : > { %p34_p6 = scmp.ge.s32.totalorder %s32_s27, 2  ;;  %s966_s6 = sshll.u32 %s170_s30, 7 }
  0x46   : > { %s1024_s7 = sshll.u32 %s1374_s16, 11  ;;  %s174_s4 = scalar_lea.vmem [#allocation2], %s966_s6 }
  0x47   : > { %s1789_s27 = smov (%p34_p6, %s32_s27), 0  ;;  %s1549_s9 = scalar_lea.hbm %s1758_s0, %s1024_s7 }
  0x48   : > { %s36_s10 = ssub.s32 %s1374_s16, %s1789_s27  ;;  %s184_s11 = sshll.u32 %s174_s4, 4  ;;  %s1553_s11 = int_to_ptr.vmem [resolvable:$true] %s184_s11 }
  0x49   : > { %p39_p2 = scmp.eq.s32.totalorder %s36_s10, 0  ;;  %s1560_s18 = scalar_lea.sflag [#allocation3], %s170_s30 }
  0x4a   : > { %s1262_s19 = scalar_lea.hbm %s1549_s9, 2048  ;;  %p1776_p3 = scmp.ne.s32.totalorder %s1774_s29, 0 }
  0x4b   : > { %s1558_s28 = scalar_select %p39_p2, %s1366_s14, %s41_s20  }
  0x4c   : > { %p1263_p9 = scmp.ne.s32.totalorder %s1549_s9, %s1262_s19  ;;  %p1264_p7 = pneg %p1776_p3 }
  0x4d   : > { %s1267_s6 = scalar_lea.hbm %s1758_s0, 4096  ;;  %p1268_p13 = scmp.lt.u32.totalorder %s1549_s9, %s1758_s0 }
  0x4e   : > { %p1265_p8 = pnand %p1264_p7, %p1263_p9  ;;  %p1269_p4 = scmp.lt.u32.totalorder %s1267_s6, %s1262_s19 }
  0x4f   : > { %p1271_p10 = scmp.lt.u32.totalorder %s1262_s19, %s1549_s9 }
  0x50   : > { %p1266_p12 = pneg %p1265_p8  ;;  %p1270_p5 = por %p1269_p4, %p1268_p13 }
  0x52   : > { %p1272_p11 = por %p1271_p10, %p1270_p5 }
  0x54   : > { %p1273_p1 = pnand %p1272_p11, %p1266_p12 }
  0x56   : > { %1276 = shalt.err (!%p1273_p1)
}
  0x57   : > { %s1277_s20 = scalar_lea.vmem %s1553_s11, 2048  ;;  %s1382_s30 = smov [#allocation2]  }
  0x58   : > { %p1278_p0 = scmp.ne.s32.totalorder %s1553_s11, %s1277_s20  ;;  %s1282_s10 = sshll.u32 %s1382_s30, 4  ;;  %s1283_s10 = int_to_ptr.vmem [resolvable:$false] %s1282_s10 }
  0x59   : > { %s1284_s4 = scalar_lea.vmem %s1283_s10, 4096  ;;  %p1285_p9 = scmp.lt.s32.totalorder %s1553_s11, %s1283_s10 }
  0x5a   : > { %p1280_p6 = pnand %p1278_p0, %p1264_p7  ;;  %p1286_p8 = scmp.lt.s32.totalorder %s1284_s4, %s1277_s20 }
  0x5c   : > { %p1281_p2 = pneg %p1280_p6  ;;  %p1287_p13 = por %p1286_p8, %p1285_p9 }
  0x5e   : > { %p1288_p4 = pnand %p1287_p13, %p1281_p2 }
  0x60   : > { %1291 = shalt.err (!%p1288_p4)
}
  0x61   : > { %s1383_s19 = smov 128   ;;  %s1384_s22 = smov 8  }
  0x62   : > { %1140 = dma.hbm_to_vmem [thread:$0]  (!%p1776_p3), %s1549_s9, 2048, %s1553_s11, %s1560_s18, %s1383_s19, %s1383_s19, %s1384_s22  }
  0x63   : > { %p1777_p7 = scmp.ne.s32.totalorder %s1773_s26, 0 }
  0x64   : > { %s1591_s7 = sand.u32 (!%p1777_p7), 1, %s1362_s13   ;;  %p1778_p12 = scmp.ne.s32.totalorder (!%p1777_p7), %s1770_s23, 0 }
  0x65   : > { %196 = sbr.rel (%p1777_p7) target bundleno = 494 (0x1ee), region = 32  ;;  %s970_s6 = sshll.u32 (!%p1777_p7), %s1591_s7, 7 }
  0x66   : > { %s199_s5 = scalar_lea.sflag (!%p1777_p7), [#allocation3], %s1591_s7  ;;  %s1595_s8 = scalar_lea.vmem (!%p1777_p7), [#allocation2], %s970_s6 }
  0x6c   : > { %1345 = dma.done.wait (%p1778_p12), %s199_s5, 2048  }
  0x6d   : > { %1347 = vsyncadd (%p1778_p12), %s199_s5, 4294965248  ;;  %p1779_p3 = scmp.ne.s32.totalorder %s1768_s21, 0 }
  0x6f   : > { %1349 = dma.done.wait (%p1779_p3), [#allocation6], 80  }
  0x70   : > { %1351 = vsyncadd (%p1779_p3), [#allocation6], 4294967216  ;;  %vm278_vm0 = vcmask 1043456   ;;  %v235_v0 = vld [vmem:[%s1595_s8] sm:$0xff]  ;;  %s1385_s26 = smov 124   ;;  %v236_v3 = vld [vmem:[%s1595_s8 + $0x10] sm:$0xff] }
  0x71   : > { %v237_v1 = vld [vmem:[%s1595_s8 + $0x20] sm:$0xff]  ;;  %387 = vrot.lane.b32.xlu0 %v235_v0, %s1385_s26  ;;  %v238_v4 = vld [vmem:[%s1595_s8 + $0x30] sm:$0xff]  ;;  %vm253_vm1 = vcmask 31744   ;;  %v974_v9 = vld [vmem:[%s1595_s8 + $0x8] sm:$0xff]  ;;  %s973_s21 = sshll.u32 %s1591_s7, 6  ;;  %vm829_vm2 = vcmask 64512  }
  0x72   : > { %391 = vrot.lane.b32.xlu1 %v237_v1, %s1385_s26  ;;  %v252_v2 = vld [vmem:[#allocation5] sm:$0xf]  ;;  %1064 = vmatprep.mubr.msk.f32.mxu0 %vm253_vm1, %v235_v0  ;;  %v240_v6 = vld [vmem:[%s1595_s8 + $0x50] sm:$0xff]  ;;  %v975_v10 = vld [vmem:[%s1595_s8 + $0x18] sm:$0xff]  ;;  %s1684_s23 = scalar_lea.vmem [#allocation8], %s973_s21  ;;  %s1025_s29 = sshll.u32 %s1370_s15, 10 }
  0x73   : > { %1062 = vmatprep.subr.msk.mxu0 %vm278_vm0, %v252_v2  ;;  %1076 = vmatprep.subr.msk.mxu1 %vm278_vm0, %v252_v2  ;;  %v239_v5 = vld [vmem:[%s1595_s8 + $0x40] sm:$0xff]  ;;  %v242_v8 = vld [vmem:[%s1595_s8 + $0x70] sm:$0xff]  ;;  %v976_v11 = vld [vmem:[%s1595_s8 + $0x28] sm:$0xff]  ;;  %s854_s9 = sshll.u32 %s1684_s23, 4  ;;  %s1703_s20 = scalar_lea.hbm %s1761_s3, %s1025_s29  ;;  %s1705_s9 = int_to_ptr.vmem [resolvable:$true] %s854_s9 }
  0x74   : > { %1063 = vmatpush3.msk.msra.mxu0 %vm278_vm0, %v252_v2  ;;  %1077 = vmatpush3.msk.msra.mxu1 %vm278_vm0, %v252_v2  ;;  %v241_v7 = vld [vmem:[%s1595_s8 + $0x60] sm:$0xff]  ;;  %v977_v12 = vld [vmem:[%s1595_s8 + $0x38] sm:$0xff]  ;;  %v978_v13 = vld [vmem:[%s1595_s8 + $0x48] sm:$0xff]  ;;  %s839_s15 = scalar_lea.sflag [#allocation4], %s1591_s7  ;;  %s1292_s30 = scalar_lea.vmem %s1705_s9, 1024 }
  0x75   : > { %1090 = vmatprep.subr.msk.mxu0 %vm278_vm0, %v252_v2  ;;  %389 = vrot.lane.b32.xlu0 %v236_v3, %s1385_s26  ;;  %v979_v14 = vld [vmem:[%s1595_s8 + $0x58] sm:$0xff]  ;;  %v980_v15 = vld [vmem:[%s1595_s8 + $0x68] sm:$0xff]  ;;  %p1293_p5 = scmp.ne.s32.totalorder %s1705_s9, %s1292_s30  ;;  %p1780_p10 = scmp.ne.s32.totalorder %s1771_s24, 0 }
  0x76   : > { %393 = vrot.lane.b32.xlu1 %v238_v4, %s1385_s26  ;;  %1104 = vmatprep.subr.msk.mxu1 %vm278_vm0, %v252_v2  ;;  %v981_v16 = vld [vmem:[%s1595_s8 + $0x78] sm:$0xff]  ;;  %s1386_s10 = smov [#allocation8]  }
  0x77   : > { %1065 = vmatmul.mubr.msk.f32.vlgmr.msra.gmra.mrb[0].mxu0 %vm253_vm1, %v236_v3  ;;  %p1294_p11 = pnand %p1293_p5, %p1780_p10  ;;  %s1296_s4 = sshll.u32 %s1386_s10, 4  ;;  %s1297_s4 = int_to_ptr.vmem [resolvable:$false] %s1296_s4 }
  0x78   : > { %1091 = vmatpush3.msk.msra.mxu0 %vm278_vm0, %v252_v2  ;;  %1067 = vmatprep.mubr.msk.f32.mxu0 %vm253_vm1, %v237_v1  ;;  %s1298_s19 = scalar_lea.vmem %s1297_s4, 2048  ;;  %p1299_p0 = scmp.lt.s32.totalorder %s1705_s9, %s1297_s4 }
  0x79   : > { %395 = vrot.lane.b32.xlu0 %v239_v5, %s1385_s26  ;;  %p1295_p1 = pneg %p1294_p11  ;;  %p1300_p6 = scmp.lt.s32.totalorder %s1298_s19, %s1292_s30 }
  0x7a   : > { %397 = vrot.lane.b32.xlu1 %v240_v6, %s1385_s26 }
  0x7b   : > { %1068 = vmatmul.mubr.msk.f32.gmra.mrb[2].mxu0 %vm253_vm1, %v238_v4  ;;  %v1018_v4 = vld [vmem:[#allocation7] ss:$0 sm:$0xff]  ;;  %p1301_p2 = por %p1300_p6, %p1299_p0 }
  0x7c   : > { %1070 = vmatprep.mubr.msk.f32.mxu0 %vm253_vm1, %v239_v5 }
  0x7d   : > { %399 = vrot.lane.b32.xlu0 %v241_v7, %s1385_s26  ;;  %p1302_p9 = pnand %p1301_p2, %p1295_p1 }
  0x7e   : > { %401 = vrot.lane.b32.xlu1 %v242_v8, %s1385_s26 }
  0x7f   : > { %1071 = vmatmul.mubr.msk.f32.gmra.mrb[4].mxu0 %vm253_vm1, %v240_v6 }
  0x80   : > { %1073 = vmatprep.mubr.msk.f32.mxu0 %vm253_vm1, %v241_v7 }
  0x81   : > { %661 = vrot.lane.b32.xlu0 %v974_v9, %s1385_s26 }
  0x82   : > { %663 = vrot.lane.b32.xlu1 %v975_v10, %s1385_s26 }
  0x83   : > { %1074 = vmatmul.mubr.msk.f32.gmra.mrb[6].mxu0 %vm253_vm1, %v242_v8 }
  0x84   : > { %1092 = vmatprep.mubr.msk.f32.mxu0 %vm253_vm1, %v974_v9 }
  0x85   : > { %665 = vrot.lane.b32.xlu0 %v976_v11, %s1385_s26 }
  0x86   : > { %667 = vrot.lane.b32.xlu1 %v977_v12, %s1385_s26 }
  0x87   : > { %1093 = vmatmul.mubr.msk.f32.vlgmr.msra.gmra.mrb[8].mxu0 %vm253_vm1, %v975_v10 }
  0x88   : > { %1095 = vmatprep.mubr.msk.f32.mxu0 %vm253_vm1, %v976_v11 }
  0x89   : > { %669 = vrot.lane.b32.xlu0 %v978_v13, %s1385_s26 }
  0x8a   : > { %671 = vrot.lane.b32.xlu1 %v979_v14, %s1385_s26 }
  0x8b   : > { %1096 = vmatmul.mubr.msk.f32.gmra.mrb[10].mxu0 %vm253_vm1, %v977_v12 }
  0x8c   : > { %1098 = vmatprep.mubr.msk.f32.mxu0 %vm253_vm1, %v978_v13 }
  0x8d   : > { %673 = vrot.lane.b32.xlu0 %v980_v15, %s1385_s26 }
  0x8e   : > { %675 = vrot.lane.b32.xlu1 %v981_v16, %s1385_s26 }
  0x8f   : > { %1099 = vmatmul.mubr.msk.f32.gmra.mrb[12].mxu0 %vm253_vm1, %v979_v14 }
  0x90   : > { %1101 = vmatprep.mubr.msk.f32.mxu0 %vm253_vm1, %v980_v15 }
  0x93   : > { %1102 = vmatmul.mubr.msk.f32.gmra.mrb[14].mxu0 %vm253_vm1, %v981_v16 }
  0xe3   : > { %v388_v17 = vpop.permute.xlu0 %387 }
  0xe4   : > { %v392_v18 = vpop.permute.xlu1 %391  ;;  %1078 = vmatprep.mubr.msk.f32.mxu1 %vm253_vm1, %v388_v17 }
  0xe7   : > { %v390_v19 = vpop.permute.xlu0 %389 }
  0xe8   : > { %v394_v20 = vpop.permute.xlu1 %393  ;;  %1079 = vmatmul.mubr.msk.f32.vlgmr.msra.gmra.mrb[0].mxu1 %vm253_vm1, %v390_v19 }
  0xe9   : > { %1105 = vmatpush3.msk.msra.mxu1 %vm278_vm0, %v252_v2  ;;  %1081 = vmatprep.mubr.msk.f32.mxu1 %vm253_vm1, %v392_v18 }
  0xeb   : > { %v396_v21 = vpop.permute.xlu0 %395 }
  0xec   : > { %v398_v22 = vpop.permute.xlu1 %397  ;;  %1082 = vmatmul.mubr.msk.f32.gmra.mrb[2].mxu1 %vm253_vm1, %v394_v20 }
  0xed   : > { %1084 = vmatprep.mubr.msk.f32.mxu1 %vm253_vm1, %v396_v21 }
  0xef   : > { %v400_v23 = vpop.permute.xlu0 %399 }
  0xf0   : > { %v402_v24 = vpop.permute.xlu1 %401  ;;  %1085 = vmatmul.mubr.msk.f32.gmra.mrb[4].mxu1 %vm253_vm1, %v398_v22 }
  0xf1   : > { %1087 = vmatprep.mubr.msk.f32.mxu1 %vm253_vm1, %v400_v23 }
  0xf3   : > { %v662_v25 = vpop.permute.xlu0 %661 }
  0xf4   : > { %v664_v26 = vpop.permute.xlu1 %663  ;;  %1088 = vmatmul.mubr.msk.f32.gmra.mrb[6].mxu1 %vm253_vm1, %v402_v24 }
  0xf5   : > { %1106 = vmatprep.mubr.msk.f32.mxu1 %vm253_vm1, %v662_v25 }
  0xf7   : > { %v666_v27 = vpop.permute.xlu0 %665 }
  0xf8   : > { %v668_v28 = vpop.permute.xlu1 %667  ;;  %1107 = vmatmul.mubr.msk.f32.vlgmr.msra.gmra.mrb[8].mxu1 %vm253_vm1, %v664_v26 }
  0xf9   : > { %1109 = vmatprep.mubr.msk.f32.mxu1 %vm253_vm1, %v666_v27 }
  0xfb   : > { %v670_v29 = vpop.permute.xlu0 %669 }
  0xfc   : > { %v672_v30 = vpop.permute.xlu1 %671  ;;  %1110 = vmatmul.mubr.msk.f32.gmra.mrb[10].mxu1 %vm253_vm1, %v668_v28 }
  0xfd   : > { %1112 = vmatprep.mubr.msk.f32.mxu1 %vm253_vm1, %v670_v29 }
  0xff   : > { %v674_v31 = vpop.permute.xlu0 %673 }
 0x100   : > { %1113 = vmatmul.mubr.msk.f32.gmra.mrb[12].mxu1 %vm253_vm1, %v672_v30  ;;  %v676_v32 = vpop.permute.xlu1 %675 }
 0x101   : > { %1115 = vmatprep.mubr.msk.f32.mxu1 %vm253_vm1, %v674_v31 }
 0x104   : > { %1116 = vmatmul.mubr.msk.f32.gmra.mrb[14].mxu1 %vm253_vm1, %v676_v32 }
 0x14a   : > { %v1066_v33 = vpop.f32.mrb[0].mxu0 }
 0x14b   : > { %v348_v34 = vpop.f32.mrb[1].mxu0 }
 0x14e   : > { %v1069_v35 = vpop.f32.mrb[2].mxu0 }
 0x14f   : > { %v358_v36 = vpop.f32.mrb[3].mxu0 }
 0x152   : > { %v1072_v37 = vpop.f32.mrb[4].mxu0 }
 0x153   : > { %v368_v38 = vpop.f32.mrb[5].mxu0 }
 0x156   : > { %v1677_v39 = vpop.f32.mrb[6].mxu0 }
 0x157   : > { %v1679_v40 = vpop.f32.mrb[7].mxu0 }
 0x15a   : > { %v1094_v41 = vpop.f32.mrb[8].mxu0 }
 0x15b   : > { %v622_v42 = vpop.f32.mrb[9].mxu0 }
 0x15e   : > { %v1097_v43 = vpop.f32.mrb[10].mxu0 }
 0x15f   : > { %v632_v44 = vpop.f32.mrb[11].mxu0 }
 0x162   : > { %v1100_v45 = vpop.f32.mrb[12].mxu0 }
 0x163   : > { %v642_v46 = vpop.f32.mrb[13].mxu0 }
 0x166   : > { %v1103_v47 = vpop.f32.mrb[14].mxu0 }
 0x167   : > { %v652_v48 = vpop.f32.mrb[15].mxu0 }
 0x1bb   : > { %v1080_v49 = vpop.f32.mrb[0].mxu1 }
 0x1bc   : > { %v525_v50 = vmax.f32 %v1066_v33, %v1080_v49  ;;  %v485_v51 = vpop.f32.mrb[1].mxu1 }
 0x1bd   : > { %v524_v52 = vmax.f32 %v348_v34, %v485_v51 }
 0x1bf   : > { %v1083_v53 = vpop.f32.mrb[2].mxu1 }
 0x1c0   : > { %v527_v54 = vmax.f32 %v1069_v35, %v1083_v53  ;;  %v495_v55 = vpop.f32.mrb[3].mxu1 }
 0x1c1   : > { %v526_v56 = vmax.f32 %v358_v36, %v495_v55 }
 0x1c3   : > { %v1086_v57 = vpop.f32.mrb[4].mxu1 }
 0x1c4   : > { %v529_v58 = vmax.f32 %v1072_v37, %v1086_v57  ;;  %v505_v59 = vpop.f32.mrb[5].mxu1 }
 0x1c5   : > { %v528_v60 = vmax.f32 %v368_v38, %v505_v59 }
 0x1c7   : > { %v1089_v61 = vpop.f32.mrb[6].mxu1 }
 0x1c8   : > { %v531_v62 = vmax.f32 %v1677_v39, %v1089_v61  ;;  %v515_v63 = vpop.f32.mrb[7].mxu1 }
 0x1c9   : > { %v530_v0 = vmax.f32 %v1679_v40, %v515_v63 }
 0x1cb   : > { %v1108_v1 = vpop.f32.mrb[8].mxu1 }
 0x1cc   : > { %v799_v2 = vmax.f32 %v1094_v41, %v1108_v1  ;;  %v759_v3 = vpop.f32.mrb[9].mxu1 }
 0x1cd   : > { %v798_v5 = vmax.f32 %v622_v42, %v759_v3 }
 0x1ce   : > { %v807_v6 = vmax.f32 %v525_v50, %v799_v2 }
 0x1cf   : > { %v806_v7 = vmax.f32 %v524_v52, %v798_v5  ;;  %v1111_v8 = vpop.f32.mrb[10].mxu1 }
 0x1d0   : > { %v822_v9 = vadd.f32 %v1018_v4, %v807_v6  ;;  %v801_v10 = vmax.f32 %v1097_v43, %v1111_v8  ;;  %v769_v11 = vpop.f32.mrb[11].mxu1 }
 0x1d1   : > { %v821_v12 = vadd.f32 %v1018_v4, %v806_v7  ;;  %v800_v13 = vmax.f32 %v632_v44, %v769_v11 }
 0x1d2   : > { %831 = vst.msk [vmem:[%s1684_s23 + $0x8] sm:$0xff] %vm829_vm2, %v822_v9  ;;  %v809_v14 = vmax.f32 %v527_v54, %v801_v10 }
 0x1d3   : > { %830 = vst.msk [vmem:[%s1684_s23] sm:$0xff] %vm829_vm2, %v821_v12  ;;  %v808_v15 = vmax.f32 %v526_v56, %v800_v13  ;;  %v1114_v16 = vpop.f32.mrb[12].mxu1 }
 0x1d4   : > { %v824_v17 = vadd.f32 %v1018_v4, %v809_v14  ;;  %v803_v18 = vmax.f32 %v1100_v45, %v1114_v16  ;;  %v779_v19 = vpop.f32.mrb[13].mxu1 }
 0x1d5   : > { %v823_v20 = vadd.f32 %v1018_v4, %v808_v15  ;;  %v802_v21 = vmax.f32 %v642_v46, %v779_v19 }
 0x1d6   : > { %833 = vst.msk [vmem:[%s1684_s23 + $0x18] sm:$0xff] %vm829_vm2, %v824_v17  ;;  %v811_v22 = vmax.f32 %v529_v58, %v803_v18 }
 0x1d7   : > { %832 = vst.msk [vmem:[%s1684_s23 + $0x10] sm:$0xff] %vm829_vm2, %v823_v20  ;;  %v810_v23 = vmax.f32 %v528_v60, %v802_v21  ;;  %v1117_v24 = vpop.f32.mrb[14].mxu1 }
 0x1d8   : > { %v826_v25 = vadd.f32 %v1018_v4, %v811_v22  ;;  %v805_v26 = vmax.f32 %v1103_v47, %v1117_v24  ;;  %v789_v27 = vpop.f32.mrb[15].mxu1 }
 0x1d9   : > { %v825_v28 = vadd.f32 %v1018_v4, %v810_v23  ;;  %v804_v29 = vmax.f32 %v652_v48, %v789_v27 }
 0x1da   : > { %835 = vst.msk [vmem:[%s1684_s23 + $0x28] sm:$0xff] %vm829_vm2, %v826_v25  ;;  %v813_v30 = vmax.f32 %v531_v62, %v805_v26 }
 0x1db   : > { %834 = vst.msk [vmem:[%s1684_s23 + $0x20] sm:$0xff] %vm829_vm2, %v825_v28  ;;  %v812_v31 = vmax.f32 %v530_v0, %v804_v29 }
 0x1dc   : > { %v828_v32 = vadd.f32 %v1018_v4, %v813_v30 }
 0x1dd   : > { %v827_v33 = vadd.f32 %v1018_v4, %v812_v31 }
 0x1de   : > { %837 = vst.msk [vmem:[%s1684_s23 + $0x38] sm:$0xff] %vm829_vm2, %v828_v32 }
 0x1df   : > { %836 = vst.msk [vmem:[%s1684_s23 + $0x30] sm:$0xff] %vm829_vm2, %v827_v33 }
 0x1e0   : > { %1305 = shalt.err (!%p1302_p9)
}
 0x1e1   : > { %s1306_s22 = scalar_lea.hbm %s1703_s20, 1024  ;;  %s1310_s8 = scalar_lea.hbm %s1761_s3, 2048 }
 0x1e2   : > { %p1307_p8 = scmp.ne.s32.totalorder %s1703_s20, %s1306_s22  ;;  %p1311_p7 = scmp.lt.u32.totalorder %s1703_s20, %s1761_s3 }
 0x1e3   : > { %p1312_p12 = scmp.lt.u32.totalorder %s1310_s8, %s1306_s22  ;;  %p1314_p5 = scmp.lt.u32.totalorder %s1306_s22, %s1703_s20 }
 0x1e4   : > { %p1308_p13 = pnand %p1307_p8, %p1780_p10 }
 0x1e5   : > { %p1313_p3 = por %p1312_p12, %p1311_p7 }
 0x1e6   : > { %p1309_p4 = pneg %p1308_p13 }
 0x1e7   : > { %p1315_p11 = por %p1314_p5, %p1313_p3 }
 0x1e9   : > { %p1316_p1 = pnand %p1315_p11, %p1309_p4 }
 0x1eb   : > { %1319 = shalt.err (!%p1316_p1)
}
 0x1ec   : > { %s1387_s23 = smov 128   ;;  %s1388_s29 = smov 8  }
 0x1ed   : > { %1128 = dma.vmem_to_hbm [thread:$0]  (%p1780_p10), %s1705_s9, 1024, %s1703_s20, %s839_s15, %s1387_s23, %s1387_s23, %s1388_s29  }
 0x1ee PF: > { %s869_s11 = sand.u32 1, %s1358_s12   ;;  %p1781_p0 = scmp.ne.s32.totalorder %s1772_s25, 0 }
 0x1ef   : > { %p1782_p6 = scmp.ge.s32.totalorder %s1378_s17, 2  ;;  %s870_s18 = scalar_lea.sflag [#allocation4], %s869_s11 }
 0x1f1   : > { %p1142_p2 = pnand %p1782_p6, %p1781_p0 }
 0x1f3   : > { %1353 = dma.done.wait (!%p1142_p2), %s870_s18, 1024  }
 0x1f4   : > { %1355 = vsyncadd (!%p1142_p2), %s870_s18, 4294966272  ;;  %s20_s17 = sadd.s32 1, %s1378_s17   ;;  %s1783_s12 = smov %s1362_s13 }
 0x1f5   : > { %p17_p9 = scmp.ge.s32.totalorder %s20_s17, 4   ;;  %s1784_s13 = smov %s1366_s14 }
 0x1f6   : > { %s1785_s14 = smov %s1558_s28  ;;  %s1786_s15 = smov %s1374_s16 }
 0x1f7   : > { %s1787_s16 = smov %s1789_s27  ;;  %19 = sbr.rel (!%p17_p9) target bundleno = 7 (0x7), region = 86 }
 0x1fe   :  { %875 = vsyncpa [#allocation3], 1 }
 0x1ff   :  { %877 = vsyncpa [#allocation3 + $0x1], 1 }
 0x200   :  { %878 = vsyncpa [#allocation6], 1 }
 0x201   :  { %879 = vsyncpa [#allocation4], 1 }
 0x202   :  { %881 = vsyncpa [#allocation4 + $0x1], 1 }

</bundles_post_ra>
